<compile_context>
chip_gen: v6e
topology: v6e:2x2x1
jax: 0.10.0
libtpu: 0.0.40
codegen_flags: <defaults>
</compile_context>

<pallas_src>
import functools
import math

import jax
import jax.numpy as jnp
from jax.experimental import pallas as pl
from jax.experimental.pallas import tpu as pltpu

BN_EPS = 1e-5
_LANE = 128
_SUBLANE = 8
_MAX_TILE_B = 4096
_NEG_BIG = -1e30  # bias for padded output columns -> exp() == 0 in softmax


def _round_up(n, m):
    return ((n + m - 1) // m) * m


def _weight_training_kernel(num_layers, *refs):
    """refs = (x_ref, w0, b0, w1, b1, ..., w_{L-1}, b_{L-1}, o_ref).

    The last (w, b) pair is the output Linear (followed by softmax); all
    preceding pairs are hidden Linear layers followed by ReLU.  The BN eval
    scale is pre-folded into w0, weights are bf16, accumulation is fp32.
    """
    x_ref = refs[0]
    o_ref = refs[-1]
    p = refs[1:-1]

    h = x_ref[...]  # bf16 activation tile (tile_b, input_dims)

    # Hidden layers: Linear -> ReLU   (Dropout is identity in eval mode)
    for layer in range(num_layers - 1):
        w = p[2 * layer][...]          # bf16 (in_pad, out_pad)
        b = p[2 * layer + 1][...]      # fp32 (1, out_pad)
        h = jnp.dot(h.astype(w.dtype), w, preferred_element_type=jnp.float32) + b
        h = jnp.maximum(h, 0.0)

    # Output layer: Linear -> Softmax(dim=-1) over a lane-dense padded width.
    w = p[2 * (num_layers - 1)][...]
    b = p[2 * (num_layers - 1) + 1][...]
    logits = jnp.dot(h.astype(w.dtype), w, preferred_element_type=jnp.float32) + b
    m = jnp.max(logits, axis=-1, keepdims=True)
    e = jnp.exp(logits - m)
    denom = jnp.sum(e, axis=-1, keepdims=True)
    inv = pl.reciprocal(denom, approx=True)      # EUP vrcp
    inv = inv * (2.0 - denom * inv)              # one Newton step -> near exact
    o_ref[...] = (e * inv).astype(o_ref.dtype)


def prepare_params(params, compute_dtype=jnp.bfloat16):
    """Fold BN scale into W0, cast weights to bf16, pad every layer width to 128 lanes.

    params: list of (W_in_out, b) fp32 pairs (W already (in, out)).
    Zero-padded hidden columns pass through ReLU as 0 and the next layer's
    zero-padded rows ignore them; the last layer's padded bias is -1e30 so the
    softmax over the real columns is unchanged.
    Returns (prepped_params, out_dim, out_pad).
    """
    bn_scale = 1.0 / math.sqrt(1.0 + BN_EPS)
    num = len(params)
    out_dim = params[-1][0].shape[1]

    prepped = []
    prev_pad_in = params[0][0].shape[0]   # input_dims (x itself stays unpadded)
    for i, (w, b) in enumerate(params):
        w = jnp.asarray(w, jnp.float32)
        b = jnp.asarray(b, jnp.float32).reshape(1, -1)
        in_dim, width = w.shape
        if i == 0:
            w = w * bn_scale  # fold BatchNorm1d eval scale into first Linear
        # Pad rows (in-dim) with zeros to match the previous padded width.
        if prev_pad_in != in_dim:
            w = jnp.pad(w, ((0, prev_pad_in - in_dim), (0, 0)))
        # Pad cols (out-dim) to a lane multiple.
        width_pad = _round_up(width, _LANE)
        if width_pad != width:
            w = jnp.pad(w, ((0, 0), (0, width_pad - width)))
            pad_val = _NEG_BIG if i == num - 1 else 0.0
            b = jnp.pad(b, ((0, 0), (0, width_pad - width)), constant_values=pad_val)
        prev_pad_in = width_pad
        prepped.append((w.astype(compute_dtype), b))
    return prepped, out_dim, prev_pad_in


def _vmem_budget_bytes():
    """~80% of this generation's VMEM (headroom for compiler scratch)."""
    cap = None
    try:
        info = pltpu.get_tpu_info()
        cap = getattr(info, "vmem_capacity_bytes", None)
    except Exception:
        cap = None
    if not cap:
        cap = 64 * 1024 * 1024  # conservative (v7x-sized) fallback
    return int(cap * 0.8)


def _choose_tile_b(batch, per_row_bytes, tile_budget_bytes):
    rows_by_budget = max(_SUBLANE, tile_budget_bytes // max(per_row_bytes, 1))
    tile = min(_MAX_TILE_B, rows_by_budget)
    # Keep >= 2 grid steps when the batch allows it (v7x dual-TC / megacore).
    if batch >= 2 * _SUBLANE:
        tile = min(tile, _round_up(-(-batch // 2), _SUBLANE))
    tile = max(_SUBLANE, (tile // _SUBLANE) * _SUBLANE)
    if tile >= batch:
        tile = batch  # single block == full array dims (always layout-legal)
    return tile


def weight_training_forward(x, params, *, out_dtype=jnp.float32):
    """x: (B, input_dims).  params: list of (W_in_out, b) fp32 pairs."""
    prepped, out_dim, out_pad = prepare_params(params)
    num_layers = len(prepped)
    batch, input_dims = x.shape

    # bf16 input: the first MXU dot rounds to bf16 anyway; halves x DMA bytes.
    x = jnp.asarray(x, jnp.bfloat16)

    flat_params = []
    for w, b in prepped:
        flat_params.append(w)
        flat_params.append(b)
    param_bytes = sum(int(a.size) * a.dtype.itemsize for a in flat_params)

    out_itemsize = jnp.dtype(out_dtype).itemsize
    max_width = max([input_dims, out_pad] + [w.shape[1] for w, _ in prepped])
    per_row_bytes = (2 * input_dims * 2          # x tile, bf16, double-buffered
                     + 2 * out_pad * out_itemsize  # out tile, double-buffered
                     + 3 * max_width * 4)          # live fp32 activations
    vmem_budget = _vmem_budget_bytes()
    tile_budget = max(_SUBLANE * per_row_bytes,
                      vmem_budget - 2 * param_bytes - (4 << 20))
    tile_b = _choose_tile_b(batch, per_row_bytes, tile_budget)
    num_blocks = pl.cdiv(batch, tile_b)

    in_specs = [pl.BlockSpec((tile_b, input_dims), lambda i: (i, 0))]
    for w, b in prepped:
        # Whole-array blocks with a constant index_map: fetched once, then
        # VMEM-resident across all grid steps.
        in_specs.append(pl.BlockSpec(w.shape, lambda i: (0, 0)))
        in_specs.append(pl.BlockSpec(b.shape, lambda i: (0, 0)))
    out_spec = pl.BlockSpec((tile_b, out_pad), lambda i: (i, 0))

    flops = 2 * batch * sum(w.shape[0] * w.shape[1] for w, _ in prepped)
    bytes_accessed = (batch * input_dims * 2 + param_bytes
                      + batch * out_pad * out_itemsize)
    cost = pl.CostEstimate(flops=flops,
                           transcendentals=batch * out_pad,
                           bytes_accessed=bytes_accessed)

    kernel = functools.partial(_weight_training_kernel, num_layers)
    out = pl.pallas_call(
        kernel,
        out_shape=jax.ShapeDtypeStruct((batch, out_pad), out_dtype),
        grid=(num_blocks,),
        in_specs=in_specs,
        out_specs=out_spec,
        compiler_params=pltpu.CompilerParams(
            dimension_semantics=("parallel",),
            vmem_limit_bytes=int(vmem_budget),
        ),
        cost_estimate=cost,
    )(x, *flat_params)

    return out[:, :out_dim]


def init_params(key, input_dims, neuron_nums, weight_dims):
    """Deterministic PyTorch-Linear-style init (uniform +-1/sqrt(fan_in)).

    Weights are stored as (in, out) — i.e. already transposed for x @ W.
    """
    dims = [input_dims] + list(neuron_nums) + [weight_dims]
    params = []
    for i in range(len(dims) - 1):
        fan_in, fan_out = dims[i], dims[i + 1]
        key, kw, kb = jax.random.split(key, 3)
        bound = 1.0 / jnp.sqrt(jnp.float32(fan_in))
        w = jax.random.uniform(
            kw, (fan_in, fan_out), jnp.float32, minval=-bound, maxval=bound
        )
        b = jax.random.uniform(
            kb, (fan_out,), jnp.float32, minval=-bound, maxval=bound
        )
        params.append((w, b))
    return params


def reference_forward(x, params):
    """Plain-JAX fp32 reference of the original module's eval-mode forward."""
    h = jnp.asarray(x, jnp.float32) * (1.0 / jnp.sqrt(1.0 + BN_EPS))
    for w, b in params[:-1]:
        h = jnp.maximum(h @ w + b, 0.0)
    w, b = params[-1]
    return jax.nn.softmax(h @ w + b, axis=-1)


def reference_forward_prepared(x, prepped, out_dim):
    """Plain-JAX reference using the exact kernel-prepared (folded, padded, bf16) params."""
    h = jnp.asarray(x, jnp.bfloat16)
    for w, b in prepped[:-1]:
        h = jnp.dot(h.astype(w.dtype), w, preferred_element_type=jnp.float32) + b
        h = jnp.maximum(h, 0.0)
    w, b = prepped[-1]
    logits = jnp.dot(h.astype(w.dtype), w, preferred_element_type=jnp.float32) + b
    return jax.nn.softmax(logits, axis=-1)[:, :out_dim]


if __name__ == "__main__":
    # Small config consistent with the module:
    #   input_dims=32, neuron_nums=[64, 32], weight_dims=16, batch=8
    input_dims = 32
    neuron_nums = [64, 32]
    weight_dims = 16
    batch = 8

    key = jax.random.PRNGKey(0)
    key, kx = jax.random.split(key)
    x = jax.random.normal(kx, (batch, input_dims), jnp.float32)
    params = init_params(key, input_dims, neuron_nums, weight_dims)

    out = weight_training_forward(x, params)
    out = jax.block_until_ready(out)
    assert out.shape == (batch, weight_dims)

    # Rows sum to 1 (approx reciprocal + one NR step -> near exact).
    assert jnp.allclose(jnp.sum(out, axis=-1), 1.0, atol=5e-3)

    # Tight check vs a plain-JAX pipeline using the same prepared bf16 params.
    prepped, out_dim, _ = prepare_params(params)
    ref_same = reference_forward_prepared(x, prepped, out_dim)
    assert jnp.allclose(out, ref_same, atol=1e-2, rtol=1e-2)

    # Loose check vs the original fp32 module semantics (bf16 weight error).
    ref_f32 = reference_forward(x, params)
    assert jnp.allclose(out, ref_f32, atol=5e-2)

    print("KERNEL_OK")
</pallas_src>

<mosaic_0001>
module attributes {stable_mosaic.version = 11 : i64} {
  func.func @_weight_training_kernel(%arg0: i32, %arg1: memref<8x32xbf16, #tpu.memory_space<vmem>>, %arg2: memref<32x128xbf16, #tpu.memory_space<vmem>>, %arg3: memref<1x128xf32, #tpu.memory_space<vmem>>, %arg4: memref<128x128xbf16, #tpu.memory_space<vmem>>, %arg5: memref<1x128xf32, #tpu.memory_space<vmem>>, %arg6: memref<128x128xbf16, #tpu.memory_space<vmem>>, %arg7: memref<1x128xf32, #tpu.memory_space<vmem>>, %arg8: memref<8x128xf32, #tpu.memory_space<vmem>>) attributes {dimension_semantics = [#tpu.dimension_semantics<parallel>], iteration_bounds = array<i64: 1>, scalar_prefetch = 0 : i64, scratch_operands = 0 : i64, tpu.core_type = #tpu.core_type<tc>, window_params = [{transform_indices = @transform_0, window_bounds = array<i64: 8, 32>}, {pipeline_mode = #tpu.pipeline_mode<synchronous>, transform_indices = @transform_1, window_bounds = array<i64: 32, 128>}, {pipeline_mode = #tpu.pipeline_mode<synchronous>, transform_indices = @transform_2, window_bounds = array<i64: 1, 128>}, {pipeline_mode = #tpu.pipeline_mode<synchronous>, transform_indices = @transform_3, window_bounds = array<i64: 128, 128>}, {pipeline_mode = #tpu.pipeline_mode<synchronous>, transform_indices = @transform_4, window_bounds = array<i64: 1, 128>}, {pipeline_mode = #tpu.pipeline_mode<synchronous>, transform_indices = @transform_5, window_bounds = array<i64: 128, 128>}, {pipeline_mode = #tpu.pipeline_mode<synchronous>, transform_indices = @transform_6, window_bounds = array<i64: 1, 128>}, {transform_indices = @transform_7, window_bounds = array<i64: 8, 128>}]} {
    %c0 = arith.constant 0 : index
    %c0_0 = arith.constant 0 : index
    %0 = vector.load %arg1[%c0, %c0_0] : memref<8x32xbf16, #tpu.memory_space<vmem>>, vector<8x32xbf16>
    %c0_1 = arith.constant 0 : index
    %c0_2 = arith.constant 0 : index
    %1 = vector.load %arg2[%c0_1, %c0_2] : memref<32x128xbf16, #tpu.memory_space<vmem>>, vector<32x128xbf16>
    %c0_3 = arith.constant 0 : index
    %c0_4 = arith.constant 0 : index
    %2 = vector.load %arg3[%c0_3, %c0_4] : memref<1x128xf32, #tpu.memory_space<vmem>>, vector<1x128xf32>
    %cst = arith.constant dense<0.000000e+00> : vector<8x128xf32>
    %3 = tpu.matmul %0, %1, %cst {dimension_numbers = #tpu.dot_dimension_numbers<[1], [0], [0], [1], [0, 0, 1, 1], [], []>} : vector<8x32xbf16>, vector<32x128xbf16>, vector<8x128xf32> -> vector<8x128xf32>
    %4 = vector.broadcast %2 : vector<1x128xf32> to vector<8x128xf32>
    %5 = arith.addf %3, %4 : vector<8x128xf32>
    %cst_5 = arith.constant 0.000000e+00 : f32
    %6 = vector.broadcast %cst_5 : f32 to vector<8x128xf32>
    %7 = arith.maximumf %5, %6 : vector<8x128xf32>
    %c0_6 = arith.constant 0 : index
    %c0_7 = arith.constant 0 : index
    %8 = vector.load %arg4[%c0_6, %c0_7] : memref<128x128xbf16, #tpu.memory_space<vmem>>, vector<128x128xbf16>
    %c0_8 = arith.constant 0 : index
    %c0_9 = arith.constant 0 : index
    %9 = vector.load %arg5[%c0_8, %c0_9] : memref<1x128xf32, #tpu.memory_space<vmem>>, vector<1x128xf32>
    %10 = arith.truncf %7 : vector<8x128xf32> to vector<8x128xbf16>
    %cst_10 = arith.constant dense<0.000000e+00> : vector<8x128xf32>
    %11 = tpu.matmul %10, %8, %cst_10 {dimension_numbers = #tpu.dot_dimension_numbers<[1], [0], [0], [1], [0, 0, 1, 1], [], []>} : vector<8x128xbf16>, vector<128x128xbf16>, vector<8x128xf32> -> vector<8x128xf32>
    %12 = vector.broadcast %9 : vector<1x128xf32> to vector<8x128xf32>
    %13 = arith.addf %11, %12 : vector<8x128xf32>
    %cst_11 = arith.constant 0.000000e+00 : f32
    %14 = vector.broadcast %cst_11 : f32 to vector<8x128xf32>
    %15 = arith.maximumf %13, %14 : vector<8x128xf32>
    %c0_12 = arith.constant 0 : index
    %c0_13 = arith.constant 0 : index
    %16 = vector.load %arg6[%c0_12, %c0_13] : memref<128x128xbf16, #tpu.memory_space<vmem>>, vector<128x128xbf16>
    %c0_14 = arith.constant 0 : index
    %c0_15 = arith.constant 0 : index
    %17 = vector.load %arg7[%c0_14, %c0_15] : memref<1x128xf32, #tpu.memory_space<vmem>>, vector<1x128xf32>
    %18 = arith.truncf %15 : vector<8x128xf32> to vector<8x128xbf16>
    %cst_16 = arith.constant dense<0.000000e+00> : vector<8x128xf32>
    %19 = tpu.matmul %18, %16, %cst_16 {dimension_numbers = #tpu.dot_dimension_numbers<[1], [0], [0], [1], [0, 0, 1, 1], [], []>} : vector<8x128xbf16>, vector<128x128xbf16>, vector<8x128xf32> -> vector<8x128xf32>
    %20 = vector.broadcast %17 : vector<1x128xf32> to vector<8x128xf32>
    %21 = arith.addf %19, %20 : vector<8x128xf32>
    %cst_17 = arith.constant dense<0xFF800000> : vector<8xf32>
    %22 = vector.multi_reduction <maximumf>, %21, %cst_17 [1] : vector<8x128xf32> to vector<8xf32>
    %23 = vector.shape_cast %22 : vector<8xf32> to vector<8x1xf32>
    %24 = vector.broadcast %23 : vector<8x1xf32> to vector<8x128xf32>
    %25 = arith.subf %21, %24 : vector<8x128xf32>
    %26 = math.exp %25 : vector<8x128xf32>
    %cst_18 = arith.constant dense<0.000000e+00> : vector<8xf32>
    %27 = vector.multi_reduction <add>, %26, %cst_18 [1] : vector<8x128xf32> to vector<8xf32>
    %28 = vector.shape_cast %27 : vector<8xf32> to vector<8x1xf32>
    %29 = tpu.reciprocal %28 {approx = true} : vector<8x1xf32> -> vector<8x1xf32>
    %30 = arith.mulf %28, %29 : vector<8x1xf32>
    %cst_19 = arith.constant 2.000000e+00 : f32
    %31 = vector.broadcast %cst_19 : f32 to vector<8x1xf32>
    %32 = arith.subf %31, %30 : vector<8x1xf32>
    %33 = arith.mulf %29, %32 : vector<8x1xf32>
    %34 = vector.broadcast %33 : vector<8x1xf32> to vector<8x128xf32>
    %35 = arith.mulf %26, %34 : vector<8x128xf32>
    %c0_20 = arith.constant 0 : index
    %c0_21 = arith.constant 0 : index
    %36 = vector.load %arg8[%c0_20, %c0_21] : memref<8x128xf32, #tpu.memory_space<vmem>>, vector<8x128xf32>
    tpu.vector_store %arg8[%c0_20, %c0_21], %35 {strides = array<i32>} : memref<8x128xf32, #tpu.memory_space<vmem>>, vector<8x128xf32>,
    return
  }
  func.func @transform_0(%arg0: i32) -> (i32, i32) {
    %c0_i32 = arith.constant 0 : i32
    %c0_i32_0 = arith.constant 0 : i32
    return %arg0, %c0_i32 : i32, i32
  }
  func.func @transform_1(%arg0: i32) -> (i32, i32) {
    %c0_i32 = arith.constant 0 : i32
    %c0_i32_0 = arith.constant 0 : i32
    %c0_i32_1 = arith.constant 0 : i32
    return %c0_i32, %c0_i32_0 : i32, i32
  }
  func.func @transform_2(%arg0: i32) -> (i32, i32) {
    %c0_i32 = arith.constant 0 : i32
    %c0_i32_0 = arith.constant 0 : i32
    %c0_i32_1 = arith.constant 0 : i32
    return %c0_i32, %c0_i32_0 : i32, i32
  }
  func.func @transform_3(%arg0: i32) -> (i32, i32) {
    %c0_i32 = arith.constant 0 : i32
    %c0_i32_0 = arith.constant 0 : i32
    %c0_i32_1 = arith.constant 0 : i32
    return %c0_i32, %c0_i32_0 : i32, i32
  }
  func.func @transform_4(%arg0: i32) -> (i32, i32) {
    %c0_i32 = arith.constant 0 : i32
    %c0_i32_0 = arith.constant 0 : i32
    %c0_i32_1 = arith.constant 0 : i32
    return %c0_i32, %c0_i32_0 : i32, i32
  }
  func.func @transform_5(%arg0: i32) -> (i32, i32) {
    %c0_i32 = arith.constant 0 : i32
    %c0_i32_0 = arith.constant 0 : i32
    %c0_i32_1 = arith.constant 0 : i32
    return %c0_i32, %c0_i32_0 : i32, i32
  }
  func.func @transform_6(%arg0: i32) -> (i32, i32) {
    %c0_i32 = arith.constant 0 : i32
    %c0_i32_0 = arith.constant 0 : i32
    %c0_i32_1 = arith.constant 0 : i32
    return %c0_i32, %c0_i32_0 : i32, i32
  }
  func.func @transform_7(%arg0: i32) -> (i32, i32) {
    %c0_i32 = arith.constant 0 : i32
    %c0_i32_0 = arith.constant 0 : i32
    return %arg0, %c0_i32 : i32, i32
  }
}

</mosaic_0001>

<bundles_post_ra>
// kernel: tpu_custom_call.1
= control target key start
LH: loop header
LB: loop body
LE: loop exit
PB: predicated region body
PF: predicated region fallthrough
CT: control target
= control target key end

     0   :  { %12 = vsyncpa [#allocation3], 0  ;;  %s741_s0 = inlined_call_operand.hbm [shape: bf16[8,32], index: 0, kind: input, shape index: {}]   ;;  %s742_s1 = inlined_call_operand.hbm [shape: bf16[32,128], index: 1, kind: input, shape index: {}]   ;;  %s743_s2 = inlined_call_operand.vmem [shape: f32[1,128], index: 2, kind: input, shape index: {}]   ;;  %s744_s3 = inlined_call_operand.hbm [shape: bf16[128,128], index: 3, kind: input, shape index: {}]   ;;  %s745_s4 = inlined_call_operand.vmem [shape: f32[1,128], index: 4, kind: input, shape index: {}]   ;;  %s746_s5 = inlined_call_operand.hbm [shape: bf16[128,128], index: 5, kind: input, shape index: {}]   ;;  %s747_s6 = inlined_call_operand.vmem [shape: f32[1,128], index: 6, kind: input, shape index: {}]   ;;  %s748_s7 = inlined_call_operand.hbm [shape: f32[8,128], index: 7, kind: output, shape index: {}]  }
   0x1   :  { %13 = vsyncpa [#allocation6], 0 }
   0x2   :  { %14 = vsyncpa [#allocation9], 0 }
   0x3   :  { %15 = vsyncpa [#allocation4], 0  ;;  %s635_s24 = smov [#allocation5]  }
   0x4   :  { %s31_s25 = sshll.u32 %s635_s24, 4  ;;  %s32_s25 = int_to_ptr.vmem [resolvable:$true] %s31_s25 }
   0x5   :  { %s535_s26 = scalar_lea.vmem %s32_s25, 256  ;;  %p540_p1 = scmp.lt.s32.totalorder %s32_s25, %s32_s25 }
   0x6   :  { %p536_p0 = scmp.ne.s32.totalorder %s32_s25, %s535_s26  ;;  %p541_p2 = scmp.lt.s32.totalorder %s535_s26, %s535_s26 }
   0x8   :  { %p542_p3 = por %p541_p2, %p540_p1 }
   0xa   :  { %p543_p4 = pnand %p542_p3, %p536_p0 }
   0xc   :  { %546 = shalt.err (!%p543_p4)
}
   0xd   :  { %s636_s27 = smov 64   ;;  %s637_s28 = smov 4  }
   0xe   :  { %37 = dma.hbm_to_vmem [thread:$0]  %s742_s1, 256, %s32_s25, [#allocation6], %s636_s27, %s636_s27, %s637_s28  }
   0xf   :  { %s638_s8 = smov [#allocation2]   ;;  %s639_s10 = smov [#allocation7]  }
  0x10   :  { %s22_s9 = sshll.u32 %s638_s8, 4  ;;  %s45_s11 = sshll.u32 %s639_s10, 4  ;;  %s23_s9 = int_to_ptr.vmem [resolvable:$true] %s22_s9  ;;  %s46_s11 = int_to_ptr.vmem [resolvable:$true] %s45_s11 }
  0x11   :  { %s555_s12 = scalar_lea.vmem %s23_s9, 64  ;;  %p560_p6 = scmp.lt.s32.totalorder %s23_s9, %s23_s9 }
  0x12   :  { %p556_p5 = scmp.ne.s32.totalorder %s23_s9, %s555_s12  ;;  %p561_p7 = scmp.lt.s32.totalorder %s555_s12, %s555_s12 }
  0x14   :  { %p562_p8 = por %p561_p7, %p560_p6 }
  0x16   :  { %p563_p9 = pnand %p562_p8, %p556_p5 }
  0x18   :  { %566 = shalt.err (!%p563_p9)
}
  0x19   :  { %25 = dma.hbm_to_vmem [thread:$0]  %s741_s0, 64, %s23_s9, [#allocation3]  }
  0x1a   :  { %s575_s15 = scalar_lea.vmem %s46_s11, 1024  ;;  %p580_p11 = scmp.lt.s32.totalorder %s46_s11, %s46_s11 }
  0x1b   :  { %p576_p10 = scmp.ne.s32.totalorder %s46_s11, %s575_s15  ;;  %p581_p12 = scmp.lt.s32.totalorder %s575_s15, %s575_s15 }
  0x1d   :  { %p582_p13 = por %p581_p12, %p580_p11 }
  0x1f   :  { %p583_p0 = pnand %p582_p13, %p576_p10 }
  0x21   :  { %586 = shalt.err (!%p583_p0)
}
  0x22   :  { %51 = dma.hbm_to_vmem [thread:$0]  %s744_s3, 1024, %s46_s11, [#allocation6], %s636_s27, %s636_s27, %s637_s28  }
  0x23   :  { %s640_s17 = smov [#allocation8]  }
  0x24   :  { %s59_s18 = sshll.u32 %s640_s17, 4  ;;  %s60_s18 = int_to_ptr.vmem [resolvable:$true] %s59_s18 }
  0x25   :  { %s595_s19 = scalar_lea.vmem %s60_s18, 1024  ;;  %p600_p2 = scmp.lt.s32.totalorder %s60_s18, %s60_s18 }
  0x26   :  { %p596_p1 = scmp.ne.s32.totalorder %s60_s18, %s595_s19  ;;  %p601_p3 = scmp.lt.s32.totalorder %s595_s19, %s595_s19 }
  0x28   :  { %p602_p4 = por %p601_p3, %p600_p2 }
  0x2a   :  { %p603_p5 = pnand %p602_p4, %p596_p1 }
  0x2c   :  { %606 = shalt.err (!%p603_p5)
}
  0x2d   :  { %65 = dma.hbm_to_vmem [thread:$0]  %s746_s5, 1024, %s60_s18, [#allocation9], %s636_s27, %s636_s27, %s637_s28  }
  0x2e   :  { %627 = dma.done.wait [#allocation3], 64  }
  0x2f   :  { %628 = vsyncadd [#allocation3], 4294967232 }
  0x30   :  { %629 = dma.done.wait [#allocation6], 1280  }
  0x31   :  { %630 = vsyncadd [#allocation6], 4294966016 }
  0x32   :  { %631 = dma.done.wait [#allocation9], 1024  }
  0x33   :  { %632 = vsyncadd [#allocation9], 4294966272  ;;  %v641_v0 = vmov 0.0   ;;  %vm642_vm0 = vmmov 0   ;;  %v505_v1 = vld [vmem:[#allocation5 + $0x8] sm:$0xff]   ;;  %v506_v2 = vld [vmem:[#allocation5] sm:$0xff]  }
  0x34   :  { %448 = vmatprep.subr.bf16.mxu0 %v641_v0  ;;  %452 = vmatprep.mubr.msk.bf16.mxu0 %vm642_vm0, %v641_v0  ;;  %v507_v3 = vld [vmem:[#allocation7 + $0x38] sm:$0xff]   ;;  %vm105_vm1 = vcmask 261120   ;;  %v508_v4 = vld [vmem:[#allocation7 + $0x30] sm:$0xff]   ;;  %v81_v5 = vld [vmem:[#allocation2] sm:$0xf] }
  0x35   :  { %456 = vmatprep.subr.bf16.mxu1 %v641_v0  ;;  %472 = vmatprep.mubr.msk.bf16.mxu1 %vm642_vm0, %v641_v0  ;;  %v509_v6 = vld [vmem:[#allocation7 + $0x28] sm:$0xff]   ;;  %v510_v7 = vld [vmem:[#allocation7 + $0x20] sm:$0xff]   ;;  %v511_v8 = vld [vmem:[#allocation7 + $0x18] sm:$0xff]  }
  0x36   :  { %449 = vmatpush3.bf16.msra.mxu0 %v505_v1  ;;  %457 = vmatpush3.bf16.msra.mxu1 %v507_v3  ;;  %v512_v9 = vld [vmem:[#allocation7 + $0x10] sm:$0xff]   ;;  %v513_v10 = vld [vmem:[#allocation7 + $0x8] sm:$0xff]   ;;  %v514_v11 = vld [vmem:[#allocation7] sm:$0xff]  }
  0x37   :  { %450 = vmatprep.subr.bf16.mxu0 %v641_v0  ;;  %458 = vmatprep.subr.bf16.mxu1 %v641_v0  ;;  %v515_v12 = vld [vmem:[#allocation8 + $0x38] sm:$0xff]   ;;  %v516_v13 = vld [vmem:[#allocation8 + $0x30] sm:$0xff]   ;;  %v517_v14 = vld [vmem:[#allocation8 + $0x28] sm:$0xff]  }
  0x38   :  { %v518_v15 = vld [vmem:[#allocation8 + $0x20] sm:$0xff]   ;;  %v519_v16 = vld [vmem:[#allocation8 + $0x18] sm:$0xff]   ;;  %v520_v17 = vld [vmem:[#allocation8 + $0x10] sm:$0xff]  }
  0x39   :  { %v405_v18 = vld [vmem:[%s743_s2] ss:$0 sm:$0xff]  ;;  %v522_v27 = vld [vmem:[#allocation8] sm:$0xff]  }
  0x3a   :  { %451 = vmatpush3.bf16.msra.mxu0 %v506_v2  ;;  %459 = vmatpush3.bf16.msra.mxu1 %v508_v4  ;;  %v521_v26 = vld [vmem:[#allocation8 + $0x8] sm:$0xff]  }
  0x3b   :  { %476 = vmatprep.subr.bf16.mxu0 %v641_v0  ;;  %460 = vmatprep.subr.bf16.mxu1 %v641_v0  ;;  %v409_v28 = vld [vmem:[%s745_s4] ss:$0 sm:$0xff]  ;;  %s643_s4 = smov [#allocation10]  }
  0x3c   :  { %v418_v36 = vld [vmem:[%s747_s6] ss:$0 sm:$0xff]  ;;  %s394_s24 = sshll.u32 %s643_s4, 4  ;;  %s395_s24 = int_to_ptr.vmem [resolvable:$true] %s394_s24 }
  0x3d   :  { %453 = vmatmul.mubr.msk.bf16.vlgmr.msra.gmra.mxu0 %vm105_vm1, %v81_v5  ;;  %s607_s6 = scalar_lea.vmem %s395_s24, 128  ;;  %p612_p7 = scmp.lt.s32.totalorder %s395_s24, %s395_s24 }
  0x3e   :  { %492 = vmatprep.mubr.msk.bf16.mxu0 %vm642_vm0, %v641_v0  ;;  %461 = vmatpush3.bf16.msra.mxu1 %v509_v6  ;;  %p608_p6 = scmp.ne.s32.totalorder %s395_s24, %s607_s6  ;;  %p613_p8 = scmp.lt.s32.totalorder %s607_s6, %s607_s6 }
  0x3f   :  { %462 = vmatprep.subr.bf16.mxu1 %v641_v0  ;;  %477 = vmatpush3.bf16.msra.mxu0 %v515_v12 }
  0x40   :  { %478 = vmatprep.subr.bf16.mxu0 %v641_v0  ;;  %p614_p9 = por %p613_p8, %p612_p7 }
  0x42   :  { %463 = vmatpush3.bf16.msra.mxu1 %v510_v7  ;;  %p615_p10 = pnand %p614_p9, %p608_p6 }
  0x43   :  { %464 = vmatprep.subr.bf16.mxu1 %v641_v0  ;;  %479 = vmatpush3.bf16.msra.mxu0 %v516_v13 }
  0x44   :  { %480 = vmatprep.subr.bf16.mxu0 %v641_v0 }
  0x46   :  { %465 = vmatpush3.bf16.msra.mxu1 %v511_v8 }
  0x47   :  { %466 = vmatprep.subr.bf16.mxu1 %v641_v0  ;;  %481 = vmatpush3.bf16.msra.mxu0 %v517_v14 }
  0x48   :  { %482 = vmatprep.subr.bf16.mxu0 %v641_v0 }
  0x4a   :  { %467 = vmatpush3.bf16.msra.mxu1 %v512_v9 }
  0x4b   :  { %468 = vmatprep.subr.bf16.mxu1 %v641_v0  ;;  %483 = vmatpush3.bf16.msra.mxu0 %v518_v15 }
  0x4c   :  { %484 = vmatprep.subr.bf16.mxu0 %v641_v0 }
  0x4e   :  { %469 = vmatpush3.bf16.msra.mxu1 %v513_v10 }
  0x4f   :  { %470 = vmatprep.subr.bf16.mxu1 %v641_v0  ;;  %485 = vmatpush3.bf16.msra.mxu0 %v519_v16 }
  0x50   :  { %486 = vmatprep.subr.bf16.mxu0 %v641_v0 }
  0x52   :  { %471 = vmatpush3.bf16.msra.mxu1 %v514_v11 }
  0x53   :  { %487 = vmatpush3.bf16.msra.mxu0 %v520_v17 }
  0x54   :  { %488 = vmatprep.subr.bf16.mxu0 %v641_v0 }
  0x57   :  { %489 = vmatpush3.bf16.msra.mxu0 %v521_v26 }
  0x58   :  { %490 = vmatprep.subr.bf16.mxu0 %v641_v0 }
  0x5b   :  { %491 = vmatpush3.bf16.msra.mxu0 %v522_v27 }
  0xfd   :  { %v143_v19 = vpop.f32.mrf.mxu0 }
  0xfe   :  { %v144_v20 = vadd.f32 %v405_v18, %v143_v19 }
  0xff   :  { %v454_v21 = vpop.f32.mrf.mxu0 }
 0x100   :  { %v149_v22 = vmax.f32 %v144_v20, 0.0 }
 0x101   :  { %v146_v23 = vpop.f32.mrf.mxu0 }
 0x102   :  { %v167_v24 = vpack.c.bf16 %v149_v22, %v149_v22 }
 0x103   :  { %v455_v25 = vpop.f32.mrf.mxu0 }
 0x104   :  { %473 = vmatmul.mubr.bf16.vlgmr.msra.gmra.mxu1 %v167_v24 }
 0x1c4   :  { %v256_v29 = vpop.f32.mrf.mxu1 }
 0x1c5   :  { %v257_v30 = vadd.f32 %v409_v28, %v256_v29 }
 0x1c6   :  { %v474_v31 = vpop.f32.mrf.mxu1 }
 0x1c7   :  { %v262_v32 = vmax.f32 %v257_v30, 0.0 }
 0x1c8   :  { %v259_v33 = vpop.f32.mrf.mxu1 }
 0x1c9   :  { %v280_v34 = vpack.c.bf16 %v262_v32, %v262_v32 }
 0x1ca   :  { %v475_v35 = vpop.f32.mrf.mxu1 }
 0x1cb   :  { %493 = vmatmul.mubr.bf16.vlgmr.msra.gmra.mxu0 %v280_v34 }
 0x28b   :  { %v369_v37 = vpop.f32.mrf.mxu0 }
 0x28c   :  { %v370_v38 = vadd.f32 %v418_v36, %v369_v37 }
 0x28d   :  { %v494_v39 = vpop.f32.mrf.mxu0 }
 0x28e   :  { %375 = vmax.xlane.f32.xlu0 %v370_v38 }
 0x28f   :  { %v372_v40 = vpop.f32.mrf.mxu0 }
 0x291   :  { %v495_v41 = vpop.f32.mrf.mxu0 }
 0x317   :  { %v376_v42 = vpop.xlane.xlu0 %375 }
 0x318   :  { %v377_v43 = vsub.f32 %v370_v38, %v376_v42 }
 0x31a   :  { %v378_v44 = vmul.f32 1.442695, %v377_v43 }
 0x31c   :  { %523 = vpow2.f32 %v378_v44 }
 0x329   :  { %v524_v45 = vpop.eup %523 }
 0x32a   :  { %380 = vadd.xlane.f32.xlu0 %v524_v45 }
 0x3b3   :  { %v381_v46 = vpop.xlane.xlu0 %380 }
 0x3b4   :  { %525 = vrcp.f32 %v381_v46 }
 0x3c1   :  { %v526_v47 = vpop.eup %525 }
 0x3c2   :  { %v383_v48 = vmul.f32 %v526_v47, %v381_v46 }
 0x3c4   :  { %v384_v49 = vsub.f32 2.0, %v383_v48 }
 0x3c6   :  { %v385_v50 = vmul.f32 %v526_v47, %v384_v49 }
 0x3c8   :  { %v386_v51 = vmul.f32 %v524_v45, %v385_v50 }
 0x3ca   :  { %387 = vst [vmem:[#allocation10] sm:$0xff] %v386_v51 }
 0x3cb   :  { %618 = shalt.err (!%p615_p10)
}
 0x3cc   :  { %397 = dma.vmem_to_hbm [thread:$0]  %s395_s24, 128, %s748_s7, [#allocation4]  }
 0x3cd   :  { %633 = dma.done.wait [#allocation4], 128  }
 0x3ce   :  { %634 = vsyncadd [#allocation4], 4294967168 }
 0x3cf   :  { %401 = vsyncpa [#allocation3], 1 }
 0x3d0   :  { %402 = vsyncpa [#allocation6], 1 }
 0x3d1   :  { %403 = vsyncpa [#allocation9], 1 }
 0x3d2   :  { %404 = vsyncpa [#allocation4], 1 }

</bundles_post_ra>
